<compile_context>
chip_gen: v7x
topology: tpu7x:2x2x1
jax: 0.10.0
libtpu: 0.0.40
codegen_flags: <defaults>
</compile_context>

<pallas_src>
import jax
import jax.numpy as jnp
from jax.experimental import pallas as pl
from jax.experimental.pallas import tpu as pltpu

HIDDEN_PAD = 128   # hidden_dim 100 padded to a full lane tile
OUT_PAD = 128      # class dim 2 padded to a full lane tile (full-width softmax)
NEG_BIG = -1e30    # bias for padded output classes -> softmax prob ~ 0 (f32 only!)
DEFAULT_TB = 1024  # rows per grid step; >=512 hits ~85% of HBM roofline, and
                   # the double-buffered working set (~TB * 1.2 KB + ~90 KB of
                   # resident weights) stays far below v7x's 64 MiB VMEM.


def mlp_kernel(x_ref, w1_ref, b1_ref, w2_ref, b2_ref, o_ref):
    # ---- hidden layer: bf16 x @ bf16 W1 (f32 accumulate) + b1, ReLU --------
    h = jnp.dot(x_ref[...], w1_ref[...], preferred_element_type=jnp.float32)
    h = jnp.maximum(h + b1_ref[...], 0.0)                     # f32 elementwise

    # ---- output layer: f32 h @ f32 W2 + b2 (MXU has slack; keep accuracy) --
    logits = jnp.dot(h, w2_ref[...], preferred_element_type=jnp.float32)
    logits = logits + b2_ref[...]                             # [TB, OUT_PAD]

    # ---- softmax over the padded (lane-dense) class dimension --------------
    # Padded classes have bias -1e30 (f32), so exp(logit - m) underflows to 0
    # and they contribute nothing to the denominator.
    m = jnp.max(logits, axis=-1, keepdims=True)
    e = jnp.exp(logits - m)
    denom = jnp.sum(e, axis=-1, keepdims=True)
    probs = e / denom

    # Store only the real classes: [TB, out_dim] block -> 64x less HBM
    # writeback than the padded [TB, 128] store.
    o_ref[...] = probs[:, : o_ref.shape[-1]].astype(o_ref.dtype)


def mlp_forward(x, w1, b1, w2, b2, out_dim, *, tb=DEFAULT_TB):
    """x: [B, D_in] bf16; w1: [D_in, Hp] bf16; b1: [1, Hp] f32;
    w2: [Hp, Op] f32;  b2: [1, Op] f32 (padded classes = -1e30).
    Returns [B, out_dim] f32 softmax probabilities."""
    assert b2.dtype == jnp.float32, "-1e30 padding trick requires f32 b2"
    batch, in_dim = x.shape
    hidden_pad = w1.shape[1]
    out_pad = w2.shape[1]

    # Pad the batch to a multiple of the row tile; padded rows are discarded.
    bp = pl.cdiv(batch, tb) * tb
    if bp != batch:
        x = jnp.pad(x, ((0, bp - batch), (0, 0)))
    grid = (bp // tb,)

    resident = lambda shape: pl.BlockSpec(shape, lambda i: (0, 0))

    out = pl.pallas_call(
        mlp_kernel,
        out_shape=jax.ShapeDtypeStruct((bp, out_dim), jnp.float32),
        grid=grid,
        in_specs=[
            pl.BlockSpec((tb, in_dim), lambda i: (i, 0)),   # streamed rows
            resident(w1.shape),                             # weights stay in VMEM
            resident(b1.shape),
            resident(w2.shape),
            resident(b2.shape),
        ],
        out_specs=pl.BlockSpec((tb, out_dim), lambda i: (i, 0)),
        compiler_params=pltpu.CompilerParams(
            dimension_semantics=("parallel",)),             # megacore on v7x
        cost_estimate=pl.CostEstimate(
            flops=int(2 * bp * (in_dim * hidden_pad + hidden_pad * out_pad)),
            transcendentals=int(bp * out_pad),
            bytes_accessed=int(x.nbytes + w1.nbytes + b1.nbytes
                               + w2.nbytes + b2.nbytes + bp * out_dim * 4),
        ),
    )(x, w1, b1, w2, b2)
    return out[:batch]


def init_params(key, in_dim, hidden_dim, out_dim):
    """Deterministic init mimicking PyTorch nn.Linear (uniform +-1/sqrt(fan_in))."""
    k1, k2, k3, k4 = jax.random.split(key, 4)
    lim1 = 1.0 / jnp.sqrt(in_dim)
    lim2 = 1.0 / jnp.sqrt(hidden_dim)
    w1 = jax.random.uniform(k1, (in_dim, hidden_dim), jnp.float32, -lim1, lim1)
    b1 = jax.random.uniform(k2, (1, hidden_dim), jnp.float32, -lim1, lim1)
    w2 = jax.random.uniform(k3, (hidden_dim, out_dim), jnp.float32, -lim2, lim2)
    b2 = jax.random.uniform(k4, (1, out_dim), jnp.float32, -lim2, lim2)
    return w1, b1, w2, b2


def pad_params(w1, b1, w2, b2, hidden_pad=HIDDEN_PAD, out_pad=OUT_PAD):
    """Pad hidden/class dims to full 128-lane tiles without changing semantics."""
    in_dim, hidden = w1.shape
    out_dim = w2.shape[1]
    w1p = jnp.zeros((in_dim, hidden_pad), jnp.float32).at[:, :hidden].set(w1)
    b1p = jnp.zeros((1, hidden_pad), jnp.float32).at[:, :hidden].set(b1)
    w2p = jnp.zeros((hidden_pad, out_pad), jnp.float32).at[:hidden, :out_dim].set(w2)
    # NOTE: b2p must remain f32 -- the -1e30 padding bias relies on f32 range.
    b2p = jnp.full((1, out_pad), NEG_BIG, jnp.float32).at[:, :out_dim].set(b2)
    return w1p, b1p, w2p, b2p


if __name__ == "__main__":
    # Small shapes consistent with the module: in_dim=32, hidden_dim=100
    # (per Pilehvar), out_dim=2. batch=200 with tb=128 exercises the batch
    # grid (2 steps) and the batch-padding path.
    batch, in_dim, hidden_dim, out_dim = 200, 32, 100, 2
    tb = 128

    key = jax.random.PRNGKey(0)
    kx, kp = jax.random.split(key)
    x = jax.random.normal(kx, (batch, in_dim), jnp.float32)
    w1, b1, w2, b2 = init_params(kp, in_dim, hidden_dim, out_dim)
    w1p, b1p, w2p, b2p = pad_params(w1, b1, w2, b2)

    out = mlp_forward(
        x.astype(jnp.bfloat16),          # streamed activations in bf16
        w1p.astype(jnp.bfloat16), b1p,   # first layer: bf16 MXU, f32 accum
        w2p, b2p,                        # second layer: f32 (accuracy, MXU has slack)
        out_dim,
        tb=tb,
    )
    jax.block_until_ready(out)
    assert out.shape == (batch, out_dim)

    # Reference with the same matmul precision as the kernel
    # (bf16 first layer inputs, f32 second layer).
    h_ref = jnp.maximum(
        jnp.dot(x.astype(jnp.bfloat16), w1.astype(jnp.bfloat16),
                preferred_element_type=jnp.float32) + b1, 0.0)
    ref_bf = jax.nn.softmax(h_ref @ w2 + b2, axis=-1)
    assert jnp.allclose(out, ref_bf, atol=2e-3, rtol=2e-3)

    # Full-f32 reference for overall semantics (looser: bf16 inputs in kernel).
    ref_f32 = jax.nn.softmax(jnp.maximum(x @ w1 + b1, 0.0) @ w2 + b2, axis=-1)
    assert jnp.allclose(out, ref_f32, atol=2e-2)

    # Rows sum to 1 (exact divide in the kernel softmax).
    assert jnp.allclose(out.sum(axis=-1), 1.0, atol=1e-5)

    print("KERNEL_OK")
</pallas_src>

<mosaic_0001>
module attributes {stable_mosaic.version = 11 : i64} {
  func.func @mlp_kernel(%arg0: i32, %arg1: memref<128x32xbf16, #tpu.memory_space<vmem>>, %arg2: memref<32x128xbf16, #tpu.memory_space<vmem>>, %arg3: memref<1x128xf32, #tpu.memory_space<vmem>>, %arg4: memref<128x128xf32, #tpu.memory_space<vmem>>, %arg5: memref<1x128xf32, #tpu.memory_space<vmem>>, %arg6: memref<128x2xf32, #tpu.memory_space<vmem>>) attributes {dimension_semantics = [#tpu.dimension_semantics<parallel>], iteration_bounds = array<i64: 2>, scalar_prefetch = 0 : i64, scratch_operands = 0 : i64, tpu.core_type = #tpu.core_type<tc>, window_params = [{transform_indices = @transform_0, window_bounds = array<i64: 128, 32>}, {pipeline_mode = #tpu.pipeline_mode<synchronous>, transform_indices = @transform_1, window_bounds = array<i64: 32, 128>}, {pipeline_mode = #tpu.pipeline_mode<synchronous>, transform_indices = @transform_2, window_bounds = array<i64: 1, 128>}, {pipeline_mode = #tpu.pipeline_mode<synchronous>, transform_indices = @transform_3, window_bounds = array<i64: 128, 128>}, {pipeline_mode = #tpu.pipeline_mode<synchronous>, transform_indices = @transform_4, window_bounds = array<i64: 1, 128>}, {transform_indices = @transform_5, window_bounds = array<i64: 128, 2>}]} {
    %c0 = arith.constant 0 : index
    %c0_0 = arith.constant 0 : index
    %0 = vector.load %arg1[%c0, %c0_0] : memref<128x32xbf16, #tpu.memory_space<vmem>>, vector<128x32xbf16>
    %c0_1 = arith.constant 0 : index
    %c0_2 = arith.constant 0 : index
    %1 = vector.load %arg2[%c0_1, %c0_2] : memref<32x128xbf16, #tpu.memory_space<vmem>>, vector<32x128xbf16>
    %cst = arith.constant dense<0.000000e+00> : vector<128x128xf32>
    %2 = tpu.matmul %0, %1, %cst {dimension_numbers = #tpu.dot_dimension_numbers<[1], [0], [0], [1], [0, 0, 1, 1], [], []>} : vector<128x32xbf16>, vector<32x128xbf16>, vector<128x128xf32> -> vector<128x128xf32>
    %c0_3 = arith.constant 0 : index
    %c0_4 = arith.constant 0 : index
    %3 = vector.load %arg3[%c0_3, %c0_4] : memref<1x128xf32, #tpu.memory_space<vmem>>, vector<1x128xf32>
    %4 = vector.broadcast %3 : vector<1x128xf32> to vector<128x128xf32>
    %5 = arith.addf %2, %4 : vector<128x128xf32>
    %cst_5 = arith.constant 0.000000e+00 : f32
    %6 = vector.broadcast %cst_5 : f32 to vector<128x128xf32>
    %7 = arith.maximumf %5, %6 : vector<128x128xf32>
    %c0_6 = arith.constant 0 : index
    %c0_7 = arith.constant 0 : index
    %8 = vector.load %arg4[%c0_6, %c0_7] : memref<128x128xf32, #tpu.memory_space<vmem>>, vector<128x128xf32>
    %cst_8 = arith.constant dense<0.000000e+00> : vector<128x128xf32>
    %9 = tpu.matmul %7, %8, %cst_8 {dimension_numbers = #tpu.dot_dimension_numbers<[1], [0], [0], [1], [0, 0, 1, 1], [], []>} : vector<128x128xf32>, vector<128x128xf32>, vector<128x128xf32> -> vector<128x128xf32>
    %c0_9 = arith.constant 0 : index
    %c0_10 = arith.constant 0 : index
    %10 = vector.load %arg5[%c0_9, %c0_10] : memref<1x128xf32, #tpu.memory_space<vmem>>, vector<1x128xf32>
    %11 = vector.broadcast %10 : vector<1x128xf32> to vector<128x128xf32>
    %12 = arith.addf %9, %11 : vector<128x128xf32>
    %cst_11 = arith.constant dense<0xFF800000> : vector<128xf32>
    %13 = vector.multi_reduction <maximumf>, %12, %cst_11 [1] : vector<128x128xf32> to vector<128xf32>
    %14 = vector.shape_cast %13 : vector<128xf32> to vector<128x1xf32>
    %15 = vector.broadcast %14 : vector<128x1xf32> to vector<128x128xf32>
    %16 = arith.subf %12, %15 : vector<128x128xf32>
    %17 = math.exp %16 : vector<128x128xf32>
    %cst_12 = arith.constant dense<0.000000e+00> : vector<128xf32>
    %18 = vector.multi_reduction <add>, %17, %cst_12 [1] : vector<128x128xf32> to vector<128xf32>
    %19 = vector.shape_cast %18 : vector<128xf32> to vector<128x1xf32>
    %20 = vector.broadcast %19 : vector<128x1xf32> to vector<128x128xf32>
    %21 = arith.divf %17, %20 : vector<128x128xf32>
    %22 = vector.extract_strided_slice %21 {offsets = [0, 0], sizes = [128, 2], strides = [1, 1]} : vector<128x128xf32> to vector<128x2xf32>
    %c0_13 = arith.constant 0 : index
    %c0_14 = arith.constant 0 : index
    %23 = vector.load %arg6[%c0_13, %c0_14] : memref<128x2xf32, #tpu.memory_space<vmem>>, vector<128x2xf32>
    tpu.vector_store %arg6[%c0_13, %c0_14], %22 {strides = array<i32>} : memref<128x2xf32, #tpu.memory_space<vmem>>, vector<128x2xf32>,
    return
  }
  func.func @transform_0(%arg0: i32) -> (i32, i32) {
    %c0_i32 = arith.constant 0 : i32
    %c0_i32_0 = arith.constant 0 : i32
    return %arg0, %c0_i32 : i32, i32
  }
  func.func @transform_1(%arg0: i32) -> (i32, i32) {
    %c0_i32 = arith.constant 0 : i32
    %c0_i32_0 = arith.constant 0 : i32
    %c0_i32_1 = arith.constant 0 : i32
    return %c0_i32, %c0_i32_0 : i32, i32
  }
  func.func @transform_2(%arg0: i32) -> (i32, i32) {
    %c0_i32 = arith.constant 0 : i32
    %c0_i32_0 = arith.constant 0 : i32
    %c0_i32_1 = arith.constant 0 : i32
    return %c0_i32, %c0_i32_0 : i32, i32
  }
  func.func @transform_3(%arg0: i32) -> (i32, i32) {
    %c0_i32 = arith.constant 0 : i32
    %c0_i32_0 = arith.constant 0 : i32
    %c0_i32_1 = arith.constant 0 : i32
    return %c0_i32, %c0_i32_0 : i32, i32
  }
  func.func @transform_4(%arg0: i32) -> (i32, i32) {
    %c0_i32 = arith.constant 0 : i32
    %c0_i32_0 = arith.constant 0 : i32
    %c0_i32_1 = arith.constant 0 : i32
    return %c0_i32, %c0_i32_0 : i32, i32
  }
  func.func @transform_5(%arg0: i32) -> (i32, i32) {
    %c0_i32 = arith.constant 0 : i32
    %c0_i32_0 = arith.constant 0 : i32
    return %arg0, %c0_i32 : i32, i32
  }
}

</mosaic_0001>

<bundles_post_ra>
// kernel: tpu_custom_call.1
= control target key start
LH: loop header
LB: loop body
LE: loop exit
PB: predicated region body
PF: predicated region fallthrough
CT: control target
= control target key end

     0   :  { %s1148_s18 = smov 0   ;;  %s1377_s0 = inlined_call_operand.vmem [shape: bf16[256,32], index: 0, kind: input, shape index: {}]   ;;  %s1378_s1 = inlined_call_operand.vmem [shape: bf16[32,128], index: 1, kind: input, shape index: {}]   ;;  %s1379_s2 = inlined_call_operand.vmem [shape: f32[1,128], index: 2, kind: input, shape index: {}]   ;;  %s1380_s3 = inlined_call_operand.vmem [shape: f32[128,128], index: 3, kind: input, shape index: {}]   ;;  %s1381_s4 = inlined_call_operand.vmem [shape: f32[1,128], index: 4, kind: input, shape index: {}]   ;;  %s1382_s5 = inlined_call_operand.vmem [shape: f32[256,2], index: 5, kind: output, shape index: {}]  }
   0x1 LB: > { %s831_s19 = sadd.s32 4294967295, %s1116_s18   ;;  %p835_p0 = scmp.ge.s32.totalorder %s1116_s18, 1  ;;  %s1116_s18 = sphi %s1148_s18, %s15_s18  }
   0x2   : > { %p188_p1 = scmp.lt.s32.totalorder %s1116_s18, 3 }
   0x4   : > { %p189_p2 = pnand %p835_p0, %p188_p1 }
   0x5   : > { %v1036_v0 = vld [vmem:[%s1378_s1] sm:$0xff] (!%p189_p2)   ;;  %s836_s22 = sshll.u32 (!%p189_p2), %s831_s19, 4  ;;  %v1037_v1 = vld [vmem:[%s1378_s1 + $0x8] sm:$0xff] (!%p189_p2)   ;;  %v448_v4 = vld [vmem:[%s1380_s3 + $0x10] sm:$0xff] (!%p189_p2)  ;;  %vm308_vm0 = vcmask (!%p189_p2), 261120   ;;  %vm758_vm1 = vcmask (!%p189_p2), 15360  }
   0x6   : > { %192 = sbr.rel (%p189_p2) target bundleno = 797 (0x31d), region = 40  ;;  %p217_p3 = scmp.lt.s32.totalorder (!%p189_p2), %s836_s22, 31  ;;  %904 = vmatprep.subr.bf16.mxu0 (!%p189_p2), %v1036_v0  ;;  %v446_v2 = vld [vmem:[%s1380_s3] sm:$0xff] (!%p189_p2)  ;;  %v447_v3 = vld [vmem:[%s1380_s3 + $0x8] sm:$0xff] (!%p189_p2)  ;;  %v449_v6 = vld [vmem:[%s1380_s3 + $0x18] sm:$0xff] (!%p189_p2) }
   0x7   : > { %905 = vmatpush3.bf16.msra.mxu0 (!%p189_p2), %v1036_v0  ;;  %v980_v5 = vpack.c.bf16 (!%p189_p2), %v447_v3, %v446_v2  ;;  %v984_v7 = vpack.c.bf16 (!%p189_p2), %v449_v6, %v448_v4  ;;  %v450_v8 = vld [vmem:[%s1380_s3 + $0x20] sm:$0xff] (!%p189_p2)  ;;  %v451_v9 = vld [vmem:[%s1380_s3 + $0x28] sm:$0xff] (!%p189_p2)  ;;  %v452_v12 = vld [vmem:[%s1380_s3 + $0x30] sm:$0xff] (!%p189_p2) }
   0x8   : > { %906 = vmatprep.subr.bf16.mxu0 (!%p189_p2), %v1037_v1  ;;  %v988_v14 = vpack.c.bf16 (!%p189_p2), %v451_v9, %v450_v8  ;;  %v453_v15 = vld [vmem:[%s1380_s3 + $0x38] sm:$0xff] (!%p189_p2)  ;;  %v454_v19 = vld [vmem:[%s1380_s3 + $0x40] sm:$0xff] (!%p189_p2)  ;;  %v455_v20 = vld [vmem:[%s1380_s3 + $0x48] sm:$0xff] (!%p189_p2) }
   0x9   : > { %1012 = vmatprep.subr.bf16.mxu1 (!%p189_p2), %v980_v5  ;;  %v992_v16 = vpack.c.bf16 (!%p189_p2), %v453_v15, %v452_v12  ;;  %v996_v21 = vpack.c.bf16 (!%p189_p2), %v455_v20, %v454_v19  ;;  %v456_v22 = vld [vmem:[%s1380_s3 + $0x50] sm:$0xff] (!%p189_p2)  ;;  %v457_v23 = vld [vmem:[%s1380_s3 + $0x58] sm:$0xff] (!%p189_p2)  ;;  %v458_v27 = vld [vmem:[%s1380_s3 + $0x60] sm:$0xff] (!%p189_p2) }
   0xa   : > { %1020 = vmatpush3.bf16.msra.mxu1 (!%p189_p2), %v980_v5  ;;  %v1000_v24 = vpack.c.bf16 (!%p189_p2), %v457_v23, %v456_v22  ;;  %v459_v28 = vld [vmem:[%s1380_s3 + $0x68] sm:$0xff] (!%p189_p2)  ;;  %v460_v31 = vld [vmem:[%s1380_s3 + $0x70] sm:$0xff] (!%p189_p2)  ;;  %v461_v32 = vld [vmem:[%s1380_s3 + $0x78] sm:$0xff] (!%p189_p2) }
   0xb   : > { %907 = vmatpush3.bf16.msra.mxu0 (!%p189_p2), %v1037_v1  ;;  %1013 = vmatprep.subr.bf16.mxu1 (!%p189_p2), %v984_v7  ;;  %v1004_v29 = vpack.c.bf16 (!%p189_p2), %v459_v28, %v458_v27  ;;  %v1008_v33 = vpack.c.bf16 (!%p189_p2), %v461_v32, %v460_v31  ;;  %v840_v34 = vld [vmem:[%s1379_s2] ss:$0 sm:$0xff] (!%p189_p2) }
   0xc   : > { %981 = vmatprep.subr.bf16.mxu0 (!%p189_p2), %v980_v5  ;;  %v859_v19 = vld [vmem:[%s1381_s4] ss:$0 sm:$0xff] (!%p189_p2) }
   0xd   : > { %s1384_s22 = smov (!%p217_p3, %s836_s22), 31 }
   0xe   : > { %s837_s8 = sshll.u32 %s1384_s22, 2  ;;  %1021 = vmatpush3.bf16.msra.mxu1 %v984_v7  ;;  %s839_s17 = sshll.u32 %s1384_s22, 3 }
   0xf   : > { %s1180_s11 = scalar_lea.vmem %s1377_s0, %s837_s8  ;;  %1014 = vmatprep.subr.bf16.mxu1 %v988_v14  ;;  %s1324_s21 = scalar_lea.vmem %s1382_s5, %s839_s17 }
  0x10   : > { %v1038_v10 = vld [vmem:[%s1180_s11] sm:$0xff]   ;;  %v1039_v11 = vld [vmem:[%s1180_s11 + $0x8] sm:$0xff]   ;;  %v1040_v13 = vld [vmem:[%s1180_s11 + $0x10] sm:$0xff]  }
  0x11   : > { %908 = vmatprep.mubr.msk.bf16.mxu0 %vm308_vm0, %v1038_v10  ;;  %v1041_v17 = vld [vmem:[%s1180_s11 + $0x18] sm:$0xff]   ;;  %v1042_v18 = vld [vmem:[%s1180_s11 + $0x20] sm:$0xff]   ;;  %v1043_v25 = vld [vmem:[%s1180_s11 + $0x28] sm:$0xff]  }
  0x12   : > { %909 = vmatmul.mubr.msk.bf16.vlgmr.msra.gmra.mrb[0].mxu0 %vm308_vm0, %v1039_v11  ;;  %1022 = vmatpush3.bf16.msra.mxu1 %v988_v14  ;;  %v1044_v26 = vld [vmem:[%s1180_s11 + $0x30] sm:$0xff]   ;;  %v1045_v30 = vld [vmem:[%s1180_s11 + $0x38] sm:$0xff]  }
  0x13   : > { %912 = vmatprep.mubr.msk.bf16.mxu0 %vm308_vm0, %v1040_v13  ;;  %983 = vmatpush3.bf16.msra.mxu0 %v980_v5 }
  0x14   : > { %985 = vmatprep.subr.bf16.mxu0 %v984_v7  ;;  %1015 = vmatprep.subr.bf16.mxu1 %v992_v16 }
  0x16   : > { %1023 = vmatpush3.bf16.msra.mxu1 %v992_v16 }
  0x17   : > { %987 = vmatpush3.bf16.msra.mxu0 %v984_v7  ;;  %1016 = vmatprep.subr.bf16.mxu1 %v996_v21 }
  0x18   : > { %989 = vmatprep.subr.bf16.mxu0 %v988_v14 }
  0x1a   : > { %913 = vmatmul.mubr.msk.bf16.gmra.mrb[4].mxu0 %vm308_vm0, %v1041_v17  ;;  %1024 = vmatpush3.bf16.msra.mxu1 %v996_v21 }
  0x1b   : > { %916 = vmatprep.mubr.msk.bf16.mxu0 %vm308_vm0, %v1042_v18  ;;  %991 = vmatpush3.bf16.msra.mxu0 %v988_v14 }
  0x1c   : > { %993 = vmatprep.subr.bf16.mxu0 %v992_v16  ;;  %1017 = vmatprep.subr.bf16.mxu1 %v1000_v24 }
  0x1e   : > { %1025 = vmatpush3.bf16.msra.mxu1 %v1000_v24 }
  0x1f   : > { %995 = vmatpush3.bf16.msra.mxu0 %v992_v16  ;;  %1018 = vmatprep.subr.bf16.mxu1 %v1004_v29 }
  0x20   : > { %997 = vmatprep.subr.bf16.mxu0 %v996_v21 }
  0x22   : > { %917 = vmatmul.mubr.msk.bf16.gmra.mrb[8].mxu0 %vm308_vm0, %v1043_v25  ;;  %1026 = vmatpush3.bf16.msra.mxu1 %v1004_v29 }
  0x23   : > { %920 = vmatprep.mubr.msk.bf16.mxu0 %vm308_vm0, %v1044_v26  ;;  %999 = vmatpush3.bf16.msra.mxu0 %v996_v21 }
  0x24   : > { %1001 = vmatprep.subr.bf16.mxu0 %v1000_v24  ;;  %1019 = vmatprep.subr.bf16.mxu1 %v1008_v33 }
  0x26   : > { %1027 = vmatpush3.bf16.msra.mxu1 %v1008_v33 }
  0x27   : > { %1003 = vmatpush3.bf16.msra.mxu0 %v1000_v24 }
  0x28   : > { %1005 = vmatprep.subr.bf16.mxu0 %v1004_v29 }
  0x2a   : > { %921 = vmatmul.mubr.msk.bf16.gmra.mrb[12].mxu0 %vm308_vm0, %v1045_v30 }
  0x2b   : > { %1007 = vmatpush3.bf16.msra.mxu0 %v1004_v29 }
  0x2c   : > { %1009 = vmatprep.subr.bf16.mxu0 %v1008_v33 }
  0x2f   : > { %1011 = vmatpush3.bf16.msra.mxu0 %v1008_v33 }
  0xe5   : > { %v910_v35 = vpop.f32.mrb[0].mxu0 }
  0xe6   : > { %v367_v36 = vpop.f32.mrb[1].mxu0  ;;  %v376_v39 = vadd.f32 %v910_v35, %v840_v34 }
  0xe7   : > { %v368_v37 = vadd.f32 %v840_v34, %v367_v36  ;;  %v911_v38 = vpop.f32.mrb[2].mxu0 }
  0xe8   : > { %v370_v40 = vpop.f32.mrb[3].mxu0  ;;  %v379_v43 = vadd.f32 %v911_v38, %v840_v34  ;;  %v432_v45 = vmax.f32 %v376_v39, 0.0 }
  0xe9   : > { %v430_v41 = vmax.f32 %v368_v37, 0.0  ;;  %v371_v42 = vadd.f32 %v840_v34, %v370_v40 }
  0xea   : > { %v433_v49 = vmax.f32 %v379_v43, 0.0 }
  0xeb   : > { %v431_v44 = vmax.f32 %v371_v42, 0.0  ;;  %956 = vmatprep.mubr.f32.mxu0 %v430_v41 }
  0xed   : > { %v914_v46 = vpop.f32.mrb[4].mxu0  ;;  %957 = vmatmul.mubr.f32.vlgmr.msra.gmra.mrb[16].mxu0 %v431_v44 }
  0xee   : > { %v383_v47 = vpop.f32.mrb[5].mxu0  ;;  %959 = vmatprep.mubr.f32.mxu0 %v432_v45  ;;  %v392_v48 = vadd.f32 %v914_v46, %v840_v34 }
  0xef   : > { %v384_v50 = vadd.f32 %v840_v34, %v383_v47  ;;  %v915_v51 = vpop.f32.mrb[6].mxu0 }
  0xf0   : > { %v395_v52 = vadd.f32 %v915_v51, %v840_v34  ;;  %v386_v53 = vpop.f32.mrb[7].mxu0  ;;  %v436_v54 = vmax.f32 %v392_v48, 0.0 }
  0xf1   : > { %v434_v55 = vmax.f32 %v384_v50, 0.0  ;;  %v387_v56 = vadd.f32 %v840_v34, %v386_v53  ;;  %960 = vmatmul.mubr.f32.gmra.mrb[18].mxu0 %v433_v49 }
  0xf2   : > { %v437_v57 = vmax.f32 %v395_v52, 0.0  ;;  %965 = vmatprep.mubr.f32.mxu1 %v436_v54 }
  0xf3   : > { %v435_v58 = vmax.f32 %v387_v56, 0.0  ;;  %962 = vmatprep.mubr.f32.mxu0 %v434_v55 }
  0xf4   : > { %966 = vmatmul.mubr.f32.vlgmr.msra.gmra.mrb[0].mxu1 %v437_v57 }
  0xf5   : > { %v918_v59 = vpop.f32.mrb[8].mxu0  ;;  %963 = vmatmul.mubr.f32.gmra.mrb[20].mxu0 %v435_v58 }
  0xf6   : > { %v408_v60 = vadd.f32 %v918_v59, %v840_v34  ;;  %v399_v61 = vpop.f32.mrb[9].mxu0 }
  0xf7   : > { %v400_v62 = vadd.f32 %v840_v34, %v399_v61  ;;  %v919_v63 = vpop.f32.mrb[10].mxu0 }
  0xf8   : > { %v402_v0 = vpop.f32.mrb[11].mxu0  ;;  %v440_v3 = vmax.f32 %v408_v60, 0.0  ;;  %v411_v4 = vadd.f32 %v919_v63, %v840_v34 }
  0xf9   : > { %v438_v1 = vmax.f32 %v400_v62, 0.0  ;;  %v403_v2 = vadd.f32 %v840_v34, %v402_v0 }
  0xfa   : > { %v441_v9 = vmax.f32 %v411_v4, 0.0 }
  0xfb   : > { %v439_v5 = vmax.f32 %v403_v2, 0.0  ;;  %968 = vmatprep.mubr.f32.mxu1 %v438_v1 }
  0xfd   : > { %v922_v6 = vpop.f32.mrb[12].mxu0  ;;  %969 = vmatmul.mubr.f32.gmra.mrb[2].mxu1 %v439_v5 }
  0xfe   : > { %v424_v7 = vadd.f32 %v922_v6, %v840_v34  ;;  %v415_v8 = vpop.f32.mrb[13].mxu0  ;;  %971 = vmatprep.mubr.f32.mxu1 %v440_v3 }
  0xff   : > { %v416_v10 = vadd.f32 %v840_v34, %v415_v8  ;;  %v923_v11 = vpop.f32.mrb[14].mxu0 }
 0x100   : > { %v418_v12 = vpop.f32.mrb[15].mxu0  ;;  %v444_v15 = vmax.f32 %v424_v7, 0.0  ;;  %v427_v16 = vadd.f32 %v923_v11, %v840_v34 }
 0x101   : > { %v442_v13 = vmax.f32 %v416_v10, 0.0  ;;  %v419_v14 = vadd.f32 %v840_v34, %v418_v12  ;;  %972 = vmatmul.mubr.f32.gmra.mrb[4].mxu1 %v441_v9 }
 0x102   : > { %v445_v18 = vmax.f32 %v427_v16, 0.0 }
 0x103   : > { %v443_v17 = vmax.f32 %v419_v14, 0.0  ;;  %974 = vmatprep.mubr.f32.mxu1 %v442_v13 }
 0x105   : > { %975 = vmatmul.mubr.f32.gmra.mrb[6].mxu1 %v443_v17 }
 0x106   : > { %977 = vmatprep.mubr.f32.mxu1 %v444_v15 }
 0x109   : > { %978 = vmatmul.mubr.f32.gmra.mrb[8].mxu1 %v445_v18 }
 0x1c0   : > { %v958_v20 = vpop.f32.mrb[16].mxu0 }
 0x1c1   : > { %v541_v21 = vadd.f32 %v958_v20, %v859_v19  ;;  %v535_v22 = vpop.f32.mrb[17].mxu0 }
 0x1c2   : > { %v536_v24 = vadd.f32 %v859_v19, %v535_v22 }
 0x1c3   : > { %616 = vmax.xlane.f32.xlu0 %v541_v21 }
 0x1c4   : > { %v961_v23 = vpop.f32.mrb[18].mxu0 }
 0x1c5   : > { %v551_v25 = vadd.f32 %v961_v23, %v859_v19  ;;  %v545_v26 = vpop.f32.mrb[19].mxu0 }
 0x1c6   : > { %v546_v30 = vadd.f32 %v859_v19, %v545_v26 }
 0x1c7   : > { %v967_v27 = vpop.f32.mrb[0].mxu1  ;;  %620 = vmax.xlane.f32.xlu1 %v551_v25  ;;  %614 = vmax.xlane.f32.xlu0 %v536_v24 }
 0x1c8   : > { %v964_v28 = vpop.f32.mrb[20].mxu0  ;;  %v565_v29 = vpop.f32.mrb[1].mxu1  ;;  %v571_v33 = vadd.f32 %v967_v27, %v859_v19 }
 0x1c9   : > { %v566_v31 = vadd.f32 %v859_v19, %v565_v29  ;;  %v555_v32 = vpop.f32.mrb[21].mxu0  ;;  %v561_v36 = vadd.f32 %v964_v28, %v859_v19 }
 0x1ca   : > { %v556_v34 = vadd.f32 %v859_v19, %v555_v32 }
 0x1cb   : > { %618 = vmax.xlane.f32.xlu1 %v546_v30  ;;  %626 = vmax.xlane.f32.xlu0 %v566_v31 }
 0x1cf   : > { %628 = vmax.xlane.f32.xlu1 %v571_v33  ;;  %622 = vmax.xlane.f32.xlu0 %v556_v34 }
 0x1d0   : > { %v970_v35 = vpop.f32.mrb[2].mxu1 }
 0x1d1   : > { %v575_v37 = vpop.f32.mrb[3].mxu1  ;;  %v1243_v40 = vadd.f32 %v970_v35, %v859_v19 }
 0x1d2   : > { %v1240_v38 = vadd.f32 %v859_v19, %v575_v37 }
 0x1d3   : > { %624 = vmax.xlane.f32.xlu1 %v561_v36 }
 0x1d4   : > { %v973_v39 = vpop.f32.mrb[4].mxu1  ;;  %630 = vmax.xlane.f32.xlu0 %v1240_v38 }
 0x1d5   : > { %v585_v41 = vpop.f32.mrb[5].mxu1  ;;  %v1249_v44 = vadd.f32 %v973_v39, %v859_v19 }
 0x1d6   : > { %v1245_v42 = vadd.f32 %v859_v19, %v585_v41 }
 0x1d7   : > { %632 = vmax.xlane.f32.xlu1 %v1243_v40 }
 0x1d8   : > { %v976_v43 = vpop.f32.mrb[6].mxu1  ;;  %634 = vmax.xlane.f32.xlu0 %v1245_v42 }
 0x1d9   : > { %v595_v45 = vpop.f32.mrb[7].mxu1  ;;  %v1255_v48 = vadd.f32 %v976_v43, %v859_v19 }
 0x1da   : > { %v1251_v46 = vadd.f32 %v859_v19, %v595_v45 }
 0x1db   : > { %636 = vmax.xlane.f32.xlu1 %v1249_v44 }
 0x1dc   : > { %v979_v47 = vpop.f32.mrb[8].mxu1  ;;  %638 = vmax.xlane.f32.xlu0 %v1251_v46 }
 0x1dd   : > { %v605_v49 = vpop.f32.mrb[9].mxu1  ;;  %v1261_v51 = vadd.f32 %v979_v47, %v859_v19 }
 0x1de   : > { %v1257_v50 = vadd.f32 %v859_v19, %v605_v49 }
 0x1df   : > { %640 = vmax.xlane.f32.xlu1 %v1255_v48 }
 0x1e0   : > { %642 = vmax.xlane.f32.xlu0 %v1257_v50 }
 0x1e3   : > { %644 = vmax.xlane.f32.xlu1 %v1261_v51 }
 0x250   : > { %v617_v52 = vpop.xlane.xlu0 %616 }
 0x251   : > { %v647_v53 = vsub.f32 %v541_v21, %v617_v52 }
 0x253   : > { %v664_v54 = vmul.f32 1.442695, %v647_v53 }
 0x254   : > { %v621_v55 = vpop.xlane.xlu1 %620  ;;  %v615_v56 = vpop.xlane.xlu0 %614 }
 0x255   : > { %1046 = vpow2.f32 %v664_v54  ;;  %v649_v57 = vsub.f32 %v551_v25, %v621_v55  ;;  %v646_v58 = vsub.f32 %v536_v24, %v615_v56 }
 0x257   : > { %v668_v59 = vmul.f32 1.442695, %v649_v57  ;;  %v662_v60 = vmul.f32 1.442695, %v646_v58 }
 0x258   : > { %v619_v61 = vpop.xlane.xlu1 %618  ;;  %v627_v62 = vpop.xlane.xlu0 %626 }
 0x259   : > { %1048 = vpow2.f32 %v668_v59  ;;  %v648_v63 = vsub.f32 %v546_v30, %v619_v61  ;;  %v652_v0 = vsub.f32 %v566_v31, %v627_v62 }
 0x25a   : > { %1050 = vpow2.f32 %v662_v60 }
 0x25b   : > { %v666_v1 = vmul.f32 1.442695, %v648_v63  ;;  %v674_v5 = vmul.f32 1.442695, %v652_v0 }
 0x25c   : > { %v629_v2 = vpop.xlane.xlu1 %628  ;;  %v623_v3 = vpop.xlane.xlu0 %622 }
 0x25d   : > { %1052 = vpow2.f32 %v666_v1  ;;  %v653_v4 = vsub.f32 %v571_v33, %v629_v2  ;;  %v650_v6 = vsub.f32 %v556_v34, %v623_v3 }
 0x25f   : > { %v1264_v7 = vpop.eup %1046  ;;  %v676_v8 = vmul.f32 1.442695, %v653_v4  ;;  %v670_v12 = vmul.f32 1.442695, %v650_v6 }
 0x260   : > { %696 = vadd.xlane.f32.xlu1 %v1264_v7  ;;  %v625_v9 = vpop.xlane.xlu1 %624 }
 0x261   : > { %1054 = vpow2.f32 %v676_v8  ;;  %v651_v10 = vsub.f32 %v561_v36, %v625_v9  ;;  %v631_v11 = vpop.xlane.xlu0 %630 }
 0x262   : > { %1056 = vpow2.f32 %v674_v5  ;;  %v654_v13 = vsub.f32 %v1240_v38, %v631_v11 }
 0x263   : > { %v1268_v14 = vpop.eup %1048  ;;  %v672_v15 = vmul.f32 1.442695, %v651_v10 }
 0x264   : > { %v1270_v16 = vpop.eup %1050  ;;  %700 = vadd.xlane.f32.xlu1 %v1268_v14  ;;  %v633_v17 = vpop.xlane.xlu1 %632  ;;  %v678_v20 = vmul.f32 1.442695, %v654_v13 }
 0x265   : > { %1058 = vpow2.f32 %v672_v15  ;;  %v655_v18 = vsub.f32 %v1243_v40, %v633_v17  ;;  %694 = vadd.xlane.f32.xlu0 %v1270_v16  ;;  %v635_v19 = vpop.xlane.xlu0 %634 }
 0x266   : > { %1060 = vpow2.f32 %v670_v12  ;;  %v656_v21 = vsub.f32 %v1245_v42, %v635_v19 }
 0x267   : > { %v1276_v22 = vpop.eup %1052  ;;  %v680_v23 = vmul.f32 1.442695, %v655_v18 }
 0x268   : > { %v637_v24 = vpop.xlane.xlu1 %636  ;;  %v682_v27 = vmul.f32 1.442695, %v656_v21 }
 0x269   : > { %1062 = vpow2.f32 %v680_v23  ;;  %v657_v25 = vsub.f32 %v1249_v44, %v637_v24  ;;  %698 = vadd.xlane.f32.xlu0 %v1276_v22  ;;  %v639_v26 = vpop.xlane.xlu0 %638 }
 0x26a   : > { %1064 = vpow2.f32 %v678_v20  ;;  %v658_v28 = vsub.f32 %v1251_v46, %v639_v26 }
 0x26b   : > { %v1281_v29 = vpop.eup %1054  ;;  %v684_v30 = vmul.f32 1.442695, %v657_v25 }
 0x26c   : > { %v1283_v31 = vpop.eup %1056  ;;  %708 = vadd.xlane.f32.xlu1 %v1281_v29  ;;  %v641_v32 = vpop.xlane.xlu1 %640  ;;  %v686_v35 = vmul.f32 1.442695, %v658_v28 }
 0x26d   : > { %1066 = vpow2.f32 %v684_v30  ;;  %v659_v33 = vsub.f32 %v1255_v48, %v641_v32  ;;  %706 = vadd.xlane.f32.xlu0 %v1283_v31  ;;  %v643_v34 = vpop.xlane.xlu0 %642 }
 0x26e   : > { %1068 = vpow2.f32 %v682_v27  ;;  %v660_v36 = vsub.f32 %v1257_v50, %v643_v34 }
 0x26f   : > { %v1289_v37 = vpop.eup %1058  ;;  %v688_v38 = vmul.f32 1.442695, %v659_v33 }
 0x270   : > { %v1291_v39 = vpop.eup %1060  ;;  %704 = vadd.xlane.f32.xlu1 %v1289_v37  ;;  %v645_v40 = vpop.xlane.xlu1 %644  ;;  %v690_v42 = vmul.f32 1.442695, %v660_v36 }
 0x271   : > { %1070 = vpow2.f32 %v688_v38  ;;  %v661_v41 = vsub.f32 %v1261_v51, %v645_v40  ;;  %702 = vadd.xlane.f32.xlu0 %v1291_v39 }
 0x272   : > { %1072 = vpow2.f32 %v686_v35 }
 0x273   : > { %v1296_v43 = vpop.eup %1062  ;;  %v692_v44 = vmul.f32 1.442695, %v661_v41 }
 0x274   : > { %v1298_v45 = vpop.eup %1064  ;;  %712 = vadd.xlane.f32.xlu1 %v1296_v43 }
 0x275   : > { %1074 = vpow2.f32 %v692_v44  ;;  %710 = vadd.xlane.f32.xlu0 %v1298_v45 }
 0x276   : > { %1076 = vpow2.f32 %v690_v42 }
 0x277   : > { %v1302_v46 = vpop.eup %1066 }
 0x278   : > { %v1304_v47 = vpop.eup %1068  ;;  %716 = vadd.xlane.f32.xlu1 %v1302_v46 }
 0x279   : > { %714 = vadd.xlane.f32.xlu0 %v1304_v47 }
 0x27b   : > { %v1308_v48 = vpop.eup %1070 }
 0x27c   : > { %v1310_v49 = vpop.eup %1072  ;;  %720 = vadd.xlane.f32.xlu1 %v1308_v48 }
 0x27d   : > { %718 = vadd.xlane.f32.xlu0 %v1310_v49 }
 0x27f   : > { %v1314_v50 = vpop.eup %1074 }
 0x280   : > { %v1316_v51 = vpop.eup %1076  ;;  %724 = vadd.xlane.f32.xlu1 %v1314_v50 }
 0x281   : > { %722 = vadd.xlane.f32.xlu0 %v1316_v51 }
 0x2ed   : > { %v697_v52 = vpop.xlane.xlu1 %696 }
 0x2ee   : > { %1078 = vrcp.f32 %v697_v52 }
 0x2f1   : > { %v701_v53 = vpop.xlane.xlu1 %700 }
 0x2f2   : > { %1080 = vrcp.f32 %v701_v53  ;;  %v695_v54 = vpop.xlane.xlu0 %694 }
 0x2f3   : > { %1082 = vrcp.f32 %v695_v54 }
 0x2f6   : > { %v699_v55 = vpop.xlane.xlu0 %698 }
 0x2f7   : > { %1084 = vrcp.f32 %v699_v55 }
 0x2f8   : > { %v1079_v56 = vpop.eup %1078 }
 0x2f9   : > { %v729_v57 = vmul.f32 %v1079_v56, %v1264_v7  ;;  %v709_v58 = vpop.xlane.xlu1 %708 }
 0x2fa   : > { %1086 = vrcp.f32 %v709_v58  ;;  %v707_v59 = vpop.xlane.xlu0 %706 }
 0x2fb   : > { %760 = vst.msk [vmem:[%s1324_s21 + $0x8] sm:$0xff] %vm758_vm1, %v729_v57  ;;  %1088 = vrcp.f32 %v707_v59 }
 0x2fc   : > { %v1081_v60 = vpop.eup %1080 }
 0x2fd   : > { %v1083_v61 = vpop.eup %1082  ;;  %v733_v62 = vmul.f32 %v1081_v60, %v1268_v14  ;;  %v705_v63 = vpop.xlane.xlu1 %704 }
 0x2fe   : > { %v727_v0 = vmul.f32 %v1083_v61, %v1270_v16  ;;  %1090 = vrcp.f32 %v705_v63  ;;  %v703_v1 = vpop.xlane.xlu0 %702 }
 0x2ff   : > { %762 = vst.msk [vmem:[%s1324_s21 + $0x18] sm:$0xff] %vm758_vm1, %v733_v62  ;;  %1092 = vrcp.f32 %v703_v1 }
 0x300   : > { %759 = vst.msk [vmem:[%s1324_s21] sm:$0xff] %vm758_vm1, %v727_v0 }
 0x301   : > { %v1085_v2 = vpop.eup %1084  ;;  %v713_v3 = vpop.xlane.xlu1 %712 }
 0x302   : > { %v731_v4 = vmul.f32 %v1085_v2, %v1276_v22  ;;  %1094 = vrcp.f32 %v713_v3  ;;  %v711_v5 = vpop.xlane.xlu0 %710 }
 0x303   : > { %1096 = vrcp.f32 %v711_v5 }
 0x304   : > { %v1087_v6 = vpop.eup %1086  ;;  %761 = vst.msk [vmem:[%s1324_s21 + $0x10] sm:$0xff] %vm758_vm1, %v731_v4 }
 0x305   : > { %v1089_v7 = vpop.eup %1088  ;;  %v741_v8 = vmul.f32 %v1087_v6, %v1281_v29  ;;  %v717_v9 = vpop.xlane.xlu1 %716 }
 0x306   : > { %v739_v10 = vmul.f32 %v1089_v7, %v1283_v31  ;;  %1098 = vrcp.f32 %v717_v9  ;;  %v715_v11 = vpop.xlane.xlu0 %714 }
 0x307   : > { %766 = vst.msk [vmem:[%s1324_s21 + $0x38] sm:$0xff] %vm758_vm1, %v741_v8  ;;  %1100 = vrcp.f32 %v715_v11 }
 0x308   : > { %v1091_v12 = vpop.eup %1090  ;;  %765 = vst.msk [vmem:[%s1324_s21 + $0x30] sm:$0xff] %vm758_vm1, %v739_v10 }
 0x309   : > { %v1093_v13 = vpop.eup %1092  ;;  %v737_v14 = vmul.f32 %v1091_v12, %v1289_v37  ;;  %v721_v15 = vpop.xlane.xlu1 %720 }
 0x30a   : > { %v735_v16 = vmul.f32 %v1093_v13, %v1291_v39  ;;  %1102 = vrcp.f32 %v721_v15  ;;  %v719_v17 = vpop.xlane.xlu0 %718 }
 0x30b   : > { %764 = vst.msk [vmem:[%s1324_s21 + $0x28] sm:$0xff] %vm758_vm1, %v737_v14  ;;  %1104 = vrcp.f32 %v719_v17 }
 0x30c   : > { %v1095_v18 = vpop.eup %1094  ;;  %763 = vst.msk [vmem:[%s1324_s21 + $0x20] sm:$0xff] %vm758_vm1, %v735_v16 }
 0x30d   : > { %v1097_v19 = vpop.eup %1096  ;;  %v745_v20 = vmul.f32 %v1095_v18, %v1296_v43  ;;  %v725_v21 = vpop.xlane.xlu1 %724 }
 0x30e   : > { %v743_v22 = vmul.f32 %v1097_v19, %v1298_v45  ;;  %1106 = vrcp.f32 %v725_v21  ;;  %v723_v23 = vpop.xlane.xlu0 %722 }
 0x30f   : > { %768 = vst.msk [vmem:[%s1324_s21 + $0x48] sm:$0xff] %vm758_vm1, %v745_v20  ;;  %1108 = vrcp.f32 %v723_v23 }
 0x310   : > { %v1099_v24 = vpop.eup %1098  ;;  %767 = vst.msk [vmem:[%s1324_s21 + $0x40] sm:$0xff] %vm758_vm1, %v743_v22 }
 0x311   : > { %v1101_v25 = vpop.eup %1100  ;;  %v749_v26 = vmul.f32 %v1099_v24, %v1302_v46 }
 0x312   : > { %v747_v27 = vmul.f32 %v1101_v25, %v1304_v47 }
 0x313   : > { %770 = vst.msk [vmem:[%s1324_s21 + $0x58] sm:$0xff] %vm758_vm1, %v749_v26 }
 0x314   : > { %v1103_v28 = vpop.eup %1102  ;;  %769 = vst.msk [vmem:[%s1324_s21 + $0x50] sm:$0xff] %vm758_vm1, %v747_v27 }
 0x315   : > { %v1105_v29 = vpop.eup %1104  ;;  %v753_v30 = vmul.f32 %v1103_v28, %v1308_v48 }
 0x316   : > { %v751_v31 = vmul.f32 %v1105_v29, %v1310_v49 }
 0x317   : > { %772 = vst.msk [vmem:[%s1324_s21 + $0x68] sm:$0xff] %vm758_vm1, %v753_v30 }
 0x318   : > { %v1107_v32 = vpop.eup %1106  ;;  %771 = vst.msk [vmem:[%s1324_s21 + $0x60] sm:$0xff] %vm758_vm1, %v751_v31 }
 0x319   : > { %v1109_v33 = vpop.eup %1108  ;;  %v757_v34 = vmul.f32 %v1107_v32, %v1314_v50 }
 0x31a   : > { %v755_v35 = vmul.f32 %v1109_v33, %v1316_v51 }
 0x31b   : > { %774 = vst.msk [vmem:[%s1324_s21 + $0x78] sm:$0xff] %vm758_vm1, %v757_v34 }
 0x31c   : > { %773 = vst.msk [vmem:[%s1324_s21 + $0x70] sm:$0xff] %vm758_vm1, %v755_v35 }
 0x31d PF: > { %s15_s18 = sadd.s32 1, %s1116_s18  }
 0x31e   : > { %p12_p4 = scmp.ge.s32.totalorder %s15_s18, 4  }
 0x320   :  { %14 = sbr.rel (!%p12_p4) target bundleno = 1 (0x1), region = 70 }

</bundles_post_ra>
